<compile_context>
chip_gen: v7x
topology: tpu7x:2x2x1
jax: 0.10.0
libtpu: 0.0.40
codegen_flags: <defaults>
</compile_context>

<pallas_src>
import functools

import jax
import jax.numpy as jnp
from jax.experimental import pallas as pl
from jax.experimental.pallas import tpu as pltpu

VMEM_SPEC = pl.BlockSpec(memory_space=pltpu.MemorySpace.VMEM)
SMEM_SPEC = pl.BlockSpec(memory_space=pltpu.MemorySpace.SMEM)


def _round_up(x, m):
    return ((x + m - 1) // m) * m


def _pad2(x, shape):
    """Zero-pad a 2-D array up to `shape` (padding contributes nothing downstream)."""
    out = jnp.zeros(shape, x.dtype)
    return out.at[: x.shape[0], : x.shape[1]].set(x)


# ---------------------------------------------------------------------------
# Pallas kernels
# ---------------------------------------------------------------------------
def _gin_layer_kernel(eps_ref, h_ref, eattr_ref, gmat_ref, smat_ref,
                      ew_ref, eb_ref, w1_ref, b1_ref, w2_ref, b2_ref,
                      o_ref, *, relu_out):
    """One fully-fused GIN layer:
         edge_emb = edge_attr @ We + be            (edge encoder, stays in VMEM)
         x_j      = gather_mat @ h                 (x[src[e]] via one-hot matmul)
         msg      = relu(x_j + edge_emb)
         agg      = scatter_mat @ msg              (scatter-add over dst)
         pre      = (1 + eps) * h + agg
         t        = relu(pre @ W1' + b1')          (MLP linear1 with BN folded)
         out      = t @ W2' + b2'                  (MLP linear2 with outer BN folded)
         out      = relu(out)  iff not last layer
    """
    h = h_ref[...]
    edge_emb = jnp.dot(eattr_ref[...], ew_ref[...],
                       preferred_element_type=jnp.float32) + eb_ref[...]
    x_j = jnp.dot(gmat_ref[...], h, preferred_element_type=jnp.float32)
    msg = jnp.maximum(x_j + edge_emb, 0.0)
    agg = jnp.dot(smat_ref[...], msg, preferred_element_type=jnp.float32)
    pre = (1.0 + eps_ref[0]) * h + agg
    t = jnp.dot(pre, w1_ref[...], preferred_element_type=jnp.float32) + b1_ref[...]
    t = jnp.maximum(t, 0.0)
    y = jnp.dot(t, w2_ref[...], preferred_element_type=jnp.float32) + b2_ref[...]
    if relu_out:
        y = jnp.maximum(y, 0.0)
    o_ref[...] = y


def gin_layer(h, edge_attr, gather_mat, scatter_mat, lp, relu_out):
    n_pad, d_pad = h.shape
    return pl.pallas_call(
        functools.partial(_gin_layer_kernel, relu_out=relu_out),
        out_shape=jax.ShapeDtypeStruct((n_pad, d_pad), jnp.float32),
        in_specs=[SMEM_SPEC] + [VMEM_SPEC] * 10,
        out_specs=VMEM_SPEC,
    )(lp["eps"], h, edge_attr, gather_mat, scatter_mat,
      lp["edge_w"], lp["edge_b"], lp["w1"], lp["b1"], lp["w2"], lp["b2"])


def _head_kernel(pool_ref, h_ref, w1_ref, b1_ref, w2_ref, b2_ref,
                 logits_ref, graph_ref):
    """Fused graph head: relu(mean_pool) -> pred1 -> relu -> pred."""
    pooled = jnp.dot(pool_ref[...], h_ref[...], preferred_element_type=jnp.float32)
    g = jnp.maximum(pooled, 0.0)
    g = jnp.dot(g, w1_ref[...], preferred_element_type=jnp.float32) + b1_ref[...]
    g = jnp.maximum(g, 0.0)
    graph_ref[...] = g
    logits_ref[...] = jnp.dot(g, w2_ref[...],
                              preferred_element_type=jnp.float32) + b2_ref[...]


def head(pool_mat, h_node, w1, b1, w2, b2):
    g_pad = pool_mat.shape[0]
    d_pad = h_node.shape[1]
    c_pad = w2.shape[1]
    return pl.pallas_call(
        _head_kernel,
        out_shape=(jax.ShapeDtypeStruct((g_pad, c_pad), jnp.float32),
                   jax.ShapeDtypeStruct((g_pad, d_pad), jnp.float32)),
        in_specs=[VMEM_SPEC] * 6,
        out_specs=(VMEM_SPEC, VMEM_SPEC),
    )(pool_mat, h_node, w1, b1, w2, b2)


# ---------------------------------------------------------------------------
# Parameter construction (deterministic, synthetic)
# ---------------------------------------------------------------------------
def init_params(key, num_layer, emb_dim, num_class):
    counter = [0]

    def w(shape, scale=0.1):
        counter[0] += 1
        k = jax.random.fold_in(key, counter[0])
        return scale * jax.random.normal(k, shape, dtype=jnp.float32)

    def bn_params():
        return dict(
            g=1.0 + w((emb_dim,), 0.05),
            b=w((emb_dim,), 0.05),
            m=w((emb_dim,), 0.05),
            v=1.0 + jnp.abs(w((emb_dim,), 0.05)),
        )

    layers = []
    for _ in range(num_layer):
        layers.append(dict(
            edge_w=w((7, emb_dim)), edge_b=w((emb_dim,)),
            mlp_w1=w((emb_dim, emb_dim)), mlp_b1=w((emb_dim,)),
            mlp_bn=bn_params(),
            mlp_w2=w((emb_dim, emb_dim)), mlp_b2=w((emb_dim,)),
            eps=jnp.zeros((1,), jnp.float32),     # torch.nn.Parameter(torch.Tensor([0]))
            bn=bn_params(),
        ))

    return dict(
        node_emb=w((1, emb_dim)),                 # torch.nn.Embedding(1, emb_dim)
        layers=layers,
        pred1_w=w((emb_dim, emb_dim)), pred1_b=w((emb_dim,)),
        pred_w=w((emb_dim, num_class)), pred_b=w((num_class,)),
    )


def _fold_bn(w_mat, b_vec, bn, eps=1e-5):
    """Fold eval-mode BatchNorm1d (running stats) into the preceding linear."""
    scale = bn["g"] * jax.lax.rsqrt(bn["v"] + eps)
    return w_mat * scale[None, :], (b_vec - bn["m"]) * scale + bn["b"]


def prepare_params(params, d_pad, k_pad, c_pad):
    layers = []
    for lp in params["layers"]:
        w1, b1 = _fold_bn(lp["mlp_w1"], lp["mlp_b1"], lp["mlp_bn"])   # MLP BN
        w2, b2 = _fold_bn(lp["mlp_w2"], lp["mlp_b2"], lp["bn"])       # outer BN
        layers.append(dict(
            eps=lp["eps"],
            edge_w=_pad2(lp["edge_w"], (k_pad, d_pad)),
            edge_b=_pad2(lp["edge_b"][None, :], (1, d_pad)),
            w1=_pad2(w1, (d_pad, d_pad)),
            b1=_pad2(b1[None, :], (1, d_pad)),
            w2=_pad2(w2, (d_pad, d_pad)),
            b2=_pad2(b2[None, :], (1, d_pad)),
        ))
    return dict(
        node_emb=_pad2(params["node_emb"], (1, d_pad)),
        layers=layers,
        pred1_w=_pad2(params["pred1_w"], (d_pad, d_pad)),
        pred1_b=_pad2(params["pred1_b"][None, :], (1, d_pad)),
        pred_w=_pad2(params["pred_w"], (d_pad, c_pad)),
        pred_b=_pad2(params["pred_b"][None, :], (1, c_pad)),
    )


# ---------------------------------------------------------------------------
# Forward pass (glue in plain JAX, compute in fused Pallas kernels)
# ---------------------------------------------------------------------------
def gnn_forward(prepped, node_idx, edge_attr_p, gather_mat, scatter_mat,
                pool_mat, num_nodes, num_graphs, emb_dim, num_class):
    num_layer = len(prepped["layers"])
    n_pad = gather_mat.shape[1]
    d_pad = prepped["node_emb"].shape[1]

    # node_encoder: Embedding(1, emb_dim) lookup (all indices are 0) -- glue.
    h0 = prepped["node_emb"][node_idx]                                  # [N, D_pad]
    h = jnp.zeros((n_pad, d_pad), jnp.float32).at[:num_nodes].set(h0)   # [N_pad, D_pad]

    for li, lp in enumerate(prepped["layers"]):
        h = gin_layer(h, edge_attr_p, gather_mat, scatter_mat, lp,
                      relu_out=(li != num_layer - 1))
        # F.dropout is identity in eval mode.

    logits_p, graph_p = head(pool_mat, h,
                             prepped["pred1_w"], prepped["pred1_b"],
                             prepped["pred_w"], prepped["pred_b"])

    h_node = h[:num_nodes, :emb_dim]
    graph = graph_p[:num_graphs, :emb_dim]
    logits = logits_p[:num_graphs, :num_class]
    return logits, graph, h_node


# ---------------------------------------------------------------------------
# Example run
# ---------------------------------------------------------------------------
if __name__ == "__main__":
    NUM_NODES = 16
    NUM_EDGES = 32
    NUM_GRAPHS = 2
    EMB_DIM = 32
    NUM_LAYER = 2
    NUM_CLASS = 3

    # TPU-friendly padded sizes (lane dim -> 128, sublane dims -> 8/128).
    D_PAD = _round_up(EMB_DIM, 128)
    N_PAD = _round_up(NUM_NODES, 128)
    E_PAD = _round_up(NUM_EDGES, 128)
    G_PAD = _round_up(NUM_GRAPHS, 8)
    C_PAD = _round_up(NUM_CLASS, 128)
    K_PAD = _round_up(7, 8)               # edge-attr contraction dim 7 -> 8

    key = jax.random.PRNGKey(0)
    k_param, k_edge, k_src, k_dst = jax.random.split(key, 4)

    params = init_params(k_param, NUM_LAYER, EMB_DIM, NUM_CLASS)
    prepped = prepare_params(params, D_PAD, K_PAD, C_PAD)

    # batched_data.x : node indices into the size-1 embedding table (all 0)
    node_idx = jnp.zeros((NUM_NODES,), dtype=jnp.int32)
    # batched_data.edge_attr : [E, 7]
    edge_attr = jax.random.normal(k_edge, (NUM_EDGES, 7), dtype=jnp.float32)
    # batched_data.edge_index : [2, E] (row 0 = source j, row 1 = target i)
    src = jax.random.randint(k_src, (NUM_EDGES,), 0, NUM_NODES)
    dst = jax.random.randint(k_dst, (NUM_EDGES,), 0, NUM_NODES)
    # batched_data.batch : graph id per node
    batch = jnp.concatenate([jnp.zeros(NUM_NODES // 2, jnp.int32),
                             jnp.ones(NUM_NODES - NUM_NODES // 2, jnp.int32)])

    # One-hot gather / scatter / pooling operators, zero-padded so padded
    # rows/cols contribute nothing (exact in f32).
    # TODO(synk): for large graphs replace these O(E*N) one-hot matmuls with a
    # scalar-prefetch index gather + segment-sorted blocked scatter-add kernel.
    gather_mat = _pad2(jax.nn.one_hot(src, NUM_NODES, dtype=jnp.float32),
                       (E_PAD, N_PAD))                                   # [E_pad, N_pad]
    scatter_mat = _pad2(jax.nn.one_hot(dst, NUM_NODES, dtype=jnp.float32).T,
                        (N_PAD, E_PAD))                                  # [N_pad, E_pad]
    pool_onehot = jax.nn.one_hot(batch, NUM_GRAPHS, dtype=jnp.float32).T
    counts = jnp.maximum(pool_onehot.sum(axis=1, keepdims=True), 1.0)
    pool_mat = _pad2(pool_onehot / counts, (G_PAD, N_PAD))               # [G_pad, N_pad]
    edge_attr_p = _pad2(edge_attr, (E_PAD, K_PAD))                       # [E_pad, 8]

    logits, graph, h_node = gnn_forward(
        prepped, node_idx, edge_attr_p, gather_mat, scatter_mat, pool_mat,
        NUM_NODES, NUM_GRAPHS, EMB_DIM, NUM_CLASS)
    jax.block_until_ready((logits, graph, h_node))

    assert logits.shape == (NUM_GRAPHS, NUM_CLASS)
    assert graph.shape == (NUM_GRAPHS, EMB_DIM)
    assert h_node.shape == (NUM_NODES, EMB_DIM)
    print("KERNEL_OK")
</pallas_src>

<mosaic_0001>
module attributes {stable_mosaic.version = 11 : i64} {
  func.func @_gin_layer_kernel(%arg0: memref<1xf32, #tpu.memory_space<smem>>, %arg1: memref<128x128xf32, #tpu.memory_space<vmem>>, %arg2: memref<128x8xf32, #tpu.memory_space<vmem>>, %arg3: memref<128x128xf32, #tpu.memory_space<vmem>>, %arg4: memref<128x128xf32, #tpu.memory_space<vmem>>, %arg5: memref<8x128xf32, #tpu.memory_space<vmem>>, %arg6: memref<1x128xf32, #tpu.memory_space<vmem>>, %arg7: memref<128x128xf32, #tpu.memory_space<vmem>>, %arg8: memref<1x128xf32, #tpu.memory_space<vmem>>, %arg9: memref<128x128xf32, #tpu.memory_space<vmem>>, %arg10: memref<1x128xf32, #tpu.memory_space<vmem>>, %arg11: memref<128x128xf32, #tpu.memory_space<vmem>>) attributes {dimension_semantics = [], scalar_prefetch = 0 : i64, scratch_operands = 0 : i64, tpu.core_type = #tpu.core_type<tc>} {
    %c0 = arith.constant 0 : index
    %c0_0 = arith.constant 0 : index
    %0 = vector.load %arg1[%c0, %c0_0] : memref<128x128xf32, #tpu.memory_space<vmem>>, vector<128x128xf32>
    %c0_1 = arith.constant 0 : index
    %c0_2 = arith.constant 0 : index
    %1 = vector.load %arg2[%c0_1, %c0_2] : memref<128x8xf32, #tpu.memory_space<vmem>>, vector<128x8xf32>
    %c0_3 = arith.constant 0 : index
    %c0_4 = arith.constant 0 : index
    %2 = vector.load %arg5[%c0_3, %c0_4] : memref<8x128xf32, #tpu.memory_space<vmem>>, vector<8x128xf32>
    %cst = arith.constant dense<0.000000e+00> : vector<128x128xf32>
    %3 = tpu.matmul %1, %2, %cst {dimension_numbers = #tpu.dot_dimension_numbers<[1], [0], [0], [1], [0, 0, 1, 1], [], []>} : vector<128x8xf32>, vector<8x128xf32>, vector<128x128xf32> -> vector<128x128xf32>
    %c0_5 = arith.constant 0 : index
    %c0_6 = arith.constant 0 : index
    %4 = vector.load %arg6[%c0_5, %c0_6] : memref<1x128xf32, #tpu.memory_space<vmem>>, vector<1x128xf32>
    %5 = vector.broadcast %4 : vector<1x128xf32> to vector<128x128xf32>
    %6 = arith.addf %3, %5 : vector<128x128xf32>
    %c0_7 = arith.constant 0 : index
    %c0_8 = arith.constant 0 : index
    %7 = vector.load %arg3[%c0_7, %c0_8] : memref<128x128xf32, #tpu.memory_space<vmem>>, vector<128x128xf32>
    %cst_9 = arith.constant dense<0.000000e+00> : vector<128x128xf32>
    %8 = tpu.matmul %7, %0, %cst_9 {dimension_numbers = #tpu.dot_dimension_numbers<[1], [0], [0], [1], [0, 0, 1, 1], [], []>} : vector<128x128xf32>, vector<128x128xf32>, vector<128x128xf32> -> vector<128x128xf32>
    %9 = arith.addf %8, %6 : vector<128x128xf32>
    %cst_10 = arith.constant 0.000000e+00 : f32
    %10 = vector.broadcast %cst_10 : f32 to vector<128x128xf32>
    %11 = arith.maximumf %9, %10 : vector<128x128xf32>
    %c0_11 = arith.constant 0 : index
    %c0_12 = arith.constant 0 : index
    %12 = vector.load %arg4[%c0_11, %c0_12] : memref<128x128xf32, #tpu.memory_space<vmem>>, vector<128x128xf32>
    %cst_13 = arith.constant dense<0.000000e+00> : vector<128x128xf32>
    %13 = tpu.matmul %12, %11, %cst_13 {dimension_numbers = #tpu.dot_dimension_numbers<[1], [0], [0], [1], [0, 0, 1, 1], [], []>} : vector<128x128xf32>, vector<128x128xf32>, vector<128x128xf32> -> vector<128x128xf32>
    %c0_14 = arith.constant 0 : index
    %14 = memref.load %arg0[%c0_14] : memref<1xf32, #tpu.memory_space<smem>>
    %cst_15 = arith.constant 1.000000e+00 : f32
    %15 = arith.addf %cst_15, %14 : f32
    %16 = vector.broadcast %15 : f32 to vector<128x128xf32>
    %17 = arith.mulf %16, %0 : vector<128x128xf32>
    %18 = arith.addf %17, %13 : vector<128x128xf32>
    %c0_16 = arith.constant 0 : index
    %c0_17 = arith.constant 0 : index
    %19 = vector.load %arg7[%c0_16, %c0_17] : memref<128x128xf32, #tpu.memory_space<vmem>>, vector<128x128xf32>
    %cst_18 = arith.constant dense<0.000000e+00> : vector<128x128xf32>
    %20 = tpu.matmul %18, %19, %cst_18 {dimension_numbers = #tpu.dot_dimension_numbers<[1], [0], [0], [1], [0, 0, 1, 1], [], []>} : vector<128x128xf32>, vector<128x128xf32>, vector<128x128xf32> -> vector<128x128xf32>
    %c0_19 = arith.constant 0 : index
    %c0_20 = arith.constant 0 : index
    %21 = vector.load %arg8[%c0_19, %c0_20] : memref<1x128xf32, #tpu.memory_space<vmem>>, vector<1x128xf32>
    %22 = vector.broadcast %21 : vector<1x128xf32> to vector<128x128xf32>
    %23 = arith.addf %20, %22 : vector<128x128xf32>
    %cst_21 = arith.constant 0.000000e+00 : f32
    %24 = vector.broadcast %cst_21 : f32 to vector<128x128xf32>
    %25 = arith.maximumf %23, %24 : vector<128x128xf32>
    %c0_22 = arith.constant 0 : index
    %c0_23 = arith.constant 0 : index
    %26 = vector.load %arg9[%c0_22, %c0_23] : memref<128x128xf32, #tpu.memory_space<vmem>>, vector<128x128xf32>
    %cst_24 = arith.constant dense<0.000000e+00> : vector<128x128xf32>
    %27 = tpu.matmul %25, %26, %cst_24 {dimension_numbers = #tpu.dot_dimension_numbers<[1], [0], [0], [1], [0, 0, 1, 1], [], []>} : vector<128x128xf32>, vector<128x128xf32>, vector<128x128xf32> -> vector<128x128xf32>
    %c0_25 = arith.constant 0 : index
    %c0_26 = arith.constant 0 : index
    %28 = vector.load %arg10[%c0_25, %c0_26] : memref<1x128xf32, #tpu.memory_space<vmem>>, vector<1x128xf32>
    %29 = vector.broadcast %28 : vector<1x128xf32> to vector<128x128xf32>
    %30 = arith.addf %27, %29 : vector<128x128xf32>
    %cst_27 = arith.constant 0.000000e+00 : f32
    %31 = vector.broadcast %cst_27 : f32 to vector<128x128xf32>
    %32 = arith.maximumf %30, %31 : vector<128x128xf32>
    %c0_28 = arith.constant 0 : index
    %c0_29 = arith.constant 0 : index
    %33 = vector.load %arg11[%c0_28, %c0_29] : memref<128x128xf32, #tpu.memory_space<vmem>>, vector<128x128xf32>
    tpu.vector_store %arg11[%c0_28, %c0_29], %32 {strides = array<i32>} : memref<128x128xf32, #tpu.memory_space<vmem>>, vector<128x128xf32>,
    return
  }
}

</mosaic_0001>

<bundles_post_ra>
// kernel: tpu_custom_call.1
= control target key start
LH: loop header
LB: loop body
LE: loop exit
PB: predicated region body
PF: predicated region fallthrough
CT: control target
= control target key end

     0   :  { %17 = vsyncpa [#allocation4], 0  ;;  %s2169_s0 = inlined_call_operand.<no memory space> [shape: f32[1], index: 0, kind: input, shape index: {}]   ;;  %s2170_s1 = inlined_call_operand.vmem [shape: f32[128,128], index: 1, kind: input, shape index: {}]   ;;  %s2171_s2 = inlined_call_operand.vmem [shape: f32[128,8], index: 2, kind: input, shape index: {}]   ;;  %s2172_s3 = inlined_call_operand.hbm [shape: f32[128,128], index: 3, kind: input, shape index: {}]   ;;  %s2173_s4 = inlined_call_operand.hbm [shape: f32[128,128], index: 4, kind: input, shape index: {}]   ;;  %s2174_s5 = inlined_call_operand.vmem [shape: f32[8,128], index: 5, kind: input, shape index: {}]   ;;  %s2175_s6 = inlined_call_operand.vmem [shape: f32[1,128], index: 6, kind: input, shape index: {}]   ;;  %s2176_s7 = inlined_call_operand.hbm [shape: f32[128,128], index: 7, kind: input, shape index: {}]   ;;  %s2177_s8 = inlined_call_operand.vmem [shape: f32[1,128], index: 8, kind: input, shape index: {}]   ;;  %s2178_s9 = inlined_call_operand.hbm [shape: f32[128,128], index: 9, kind: input, shape index: {}]   ;;  %s2179_s10 = inlined_call_operand.vmem [shape: f32[1,128], index: 10, kind: input, shape index: {}]   ;;  %s2180_s11 = inlined_call_operand.hbm [shape: f32[128,128], index: 11, kind: output, shape index: {}]  }
   0x1   :  { %18 = vsyncpa [#allocation7], 0 }
   0x2   :  { %19 = vsyncpa [#allocation10], 0 }
   0x3   :  { %20 = vsyncpa [#allocation5], 0  ;;  %s1804_s17 = smov [#allocation6]   ;;  %s1805_s19 = smov [#allocation3]  }
   0x4   :  { %s44_s18 = sshll.u32 %s1804_s17, 4  ;;  %s32_s20 = sshll.u32 %s1805_s19, 4  ;;  %s45_s18 = int_to_ptr.vmem [resolvable:$true] %s44_s18  ;;  %s1871_s20 = int_to_ptr.vmem [resolvable:$true] %s32_s20 }
   0x5   :  { %s1686_s23 = scalar_lea.hbm %s2173_s4, 2048 }
   0x6   :  { %p1687_p0 = scmp.ne.s32.totalorder %s2173_s4, %s1686_s23  ;;  %p1690_p1 = scmp.lt.u32.totalorder %s1686_s23, %s2173_s4 }
   0x8   :  { %p1692_p2 = pnand %p1690_p1, %p1687_p0 }
   0xa   :  { %1695 = shalt.err (!%p1692_p2)
}
   0xb   :  { %s1696_s28 = scalar_lea.vmem %s45_s18, 2048  ;;  %p1701_p4 = scmp.lt.s32.totalorder %s45_s18, %s45_s18 }
   0xc   :  { %p1697_p3 = scmp.ne.s32.totalorder %s45_s18, %s1696_s28  ;;  %p1702_p5 = scmp.lt.s32.totalorder %s1696_s28, %s1696_s28 }
   0xe   :  { %p1703_p6 = por %p1702_p5, %p1701_p4 }
  0x10   :  { %p1704_p7 = pnand %p1703_p6, %p1697_p3 }
  0x12   :  { %1707 = shalt.err (!%p1704_p7)
}
  0x13   :  { %s1806_s29 = smov 128   ;;  %s1807_s30 = smov 8  }
  0x14   :  { %50 = dma.hbm_to_vmem [thread:$0]  %s2173_s4, 2048, %s45_s18, [#allocation7], %s1806_s29, %s1806_s29, %s1807_s30  }
  0x15   :  { %s1708_s16 = scalar_lea.hbm %s2172_s3, 2048 }
  0x16   :  { %p1709_p8 = scmp.ne.s32.totalorder %s2172_s3, %s1708_s16  ;;  %p1712_p9 = scmp.lt.u32.totalorder %s1708_s16, %s2172_s3 }
  0x18   :  { %p1714_p10 = pnand %p1712_p9, %p1709_p8 }
  0x1a   :  { %1717 = shalt.err (!%p1714_p10)
}
  0x1b   :  { %s1718_s23 = scalar_lea.vmem %s1871_s20, 2048  ;;  %p1723_p12 = scmp.lt.s32.totalorder %s1871_s20, %s1871_s20 }
  0x1c   :  { %p1719_p11 = scmp.ne.s32.totalorder %s1871_s20, %s1718_s23  ;;  %p1724_p13 = scmp.lt.s32.totalorder %s1718_s23, %s1718_s23 }
  0x1e   :  { %p1725_p0 = por %p1724_p13, %p1723_p12 }
  0x20   :  { %p1726_p1 = pnand %p1725_p0, %p1719_p11 }
  0x22   :  { %1729 = shalt.err (!%p1726_p1)
}
  0x23   :  { %38 = dma.hbm_to_vmem [thread:$0]  %s2172_s3, 2048, %s1871_s20, [#allocation4], %s1806_s29, %s1806_s29, %s1807_s30  }
  0x24   :  { %s1808_s24 = smov [#allocation8]   ;;  %s1809_s26 = smov [#allocation9]  }
  0x25   :  { %s60_s25 = sshll.u32 %s1808_s24, 4  ;;  %s74_s27 = sshll.u32 %s1809_s26, 4  ;;  %s61_s25 = int_to_ptr.vmem [resolvable:$true] %s60_s25  ;;  %s1908_s27 = int_to_ptr.vmem [resolvable:$true] %s74_s27 }
  0x26   :  { %s1730_s13 = scalar_lea.hbm %s2176_s7, 2048 }
  0x27   :  { %p1731_p2 = scmp.ne.s32.totalorder %s2176_s7, %s1730_s13  ;;  %p1734_p3 = scmp.lt.u32.totalorder %s1730_s13, %s2176_s7 }
  0x29   :  { %p1736_p4 = pnand %p1734_p3, %p1731_p2 }
  0x2b   :  { %1739 = shalt.err (!%p1736_p4)
}
  0x2c   :  { %s1740_s3 = scalar_lea.vmem %s61_s25, 2048  ;;  %p1745_p6 = scmp.lt.s32.totalorder %s61_s25, %s61_s25 }
  0x2d   :  { %p1741_p5 = scmp.ne.s32.totalorder %s61_s25, %s1740_s3  ;;  %p1746_p7 = scmp.lt.s32.totalorder %s1740_s3, %s1740_s3 }
  0x2f   :  { %p1747_p8 = por %p1746_p7, %p1745_p6 }
  0x31   :  { %p1748_p9 = pnand %p1747_p8, %p1741_p5 }
  0x33   :  { %1751 = shalt.err (!%p1748_p9)
}
  0x34   :  { %66 = dma.hbm_to_vmem [thread:$0]  %s2176_s7, 2048, %s61_s25, [#allocation7], %s1806_s29, %s1806_s29, %s1807_s30  }
  0x35   :  { %s1752_s23 = scalar_lea.hbm %s2178_s9, 2048 }
  0x36   :  { %p1753_p10 = scmp.ne.s32.totalorder %s2178_s9, %s1752_s23  ;;  %p1756_p11 = scmp.lt.u32.totalorder %s1752_s23, %s2178_s9 }
  0x38   :  { %p1758_p12 = pnand %p1756_p11, %p1753_p10 }
  0x3a   :  { %1761 = shalt.err (!%p1758_p12)
}
  0x3b   :  { %s1762_s28 = scalar_lea.vmem %s1908_s27, 2048  ;;  %p1767_p0 = scmp.lt.s32.totalorder %s1908_s27, %s1908_s27 }
  0x3c   :  { %p1763_p13 = scmp.ne.s32.totalorder %s1908_s27, %s1762_s28  ;;  %p1768_p1 = scmp.lt.s32.totalorder %s1762_s28, %s1762_s28 }
  0x3e   :  { %p1769_p2 = por %p1768_p1, %p1767_p0 }
  0x40   :  { %p1770_p3 = pnand %p1769_p2, %p1763_p13 }
  0x42   :  { %1773 = shalt.err (!%p1770_p3)
}
  0x43   :  { %80 = dma.hbm_to_vmem [thread:$0]  %s2178_s9, 2048, %s1908_s27, [#allocation10], %s1806_s29, %s1806_s29, %s1807_s30  }
  0x44   :  { %1796 = dma.done.wait [#allocation4], 2048  }
  0x45   :  { %1797 = vsyncadd [#allocation4], 4294965248 }
  0x46   :  { %1798 = dma.done.wait [#allocation7], 4096  }
  0x47   :  { %1799 = vsyncadd [#allocation7], 4294963200 }
  0x48   :  { %1800 = dma.done.wait [#allocation10], 2048  }
  0x49   :  { %1801 = vsyncadd [#allocation10], 4294965248  ;;  %vm135_vm0 = vcmask 64512   ;;  %v127_v0 = vld [vmem:[%s2174_s5] sm:$0xff]  ;;  %v112_v2 = vld [vmem:[%s2171_s2 + $0x8] sm:$0xff]  ;;  %s668_s13 = sadd.f32 1.0, %s2169_s0 }
  0x4a   :  { %v111_v1 = vld [vmem:[%s2171_s2] sm:$0xff]  ;;  %1269 = vmatprep.subr.mxu0 %v127_v0  ;;  %v1963_v4 = vld [vmem:[%s2170_s1 + $0x8] sm:$0xff]  ;;  %v113_v5 = vld [vmem:[%s2171_s2 + $0x10] sm:$0xff] }
  0x4b   :  { %1271 = vmatprep.mubr.msk.f32.mxu0 %vm135_vm0, %v111_v1  ;;  %v1958_v3 = vld [vmem:[%s2170_s1] sm:$0xff]  ;;  %1270 = vmatpush3.msra.mxu0 %v127_v0  ;;  %v1973_v7 = vld [vmem:[%s2170_s1 + $0x10] sm:$0xff]  ;;  %v1978_v8 = vld [vmem:[%s2170_s1 + $0x18] sm:$0xff] }
  0x4c   :  { %v1519_v6 = vpack.c.bf16 %v1963_v4, %v1958_v3  ;;  %1272 = vmatmul.mubr.msk.f32.vlgmr.msra.gmra.mrb[0].mxu0 %vm135_vm0, %v112_v2  ;;  %v1523_v9 = vpack.c.bf16 %v1978_v8, %v1973_v7  ;;  %v1986_v10 = vld [vmem:[%s2170_s1 + $0x20] sm:$0xff]  ;;  %v114_v11 = vld [vmem:[%s2171_s2 + $0x18] sm:$0xff]  ;;  %v1995_v12 = vld [vmem:[%s2170_s1 + $0x28] sm:$0xff] }
  0x4d   :  { %1274 = vmatprep.mubr.msk.f32.mxu0 %vm135_vm0, %v113_v5  ;;  %v115_v13 = vld [vmem:[%s2171_s2 + $0x20] sm:$0xff]  ;;  %v1527_v14 = vpack.c.bf16 %v1995_v12, %v1986_v10  ;;  %v2006_v15 = vld [vmem:[%s2170_s1 + $0x30] sm:$0xff]  ;;  %v2011_v16 = vld [vmem:[%s2170_s1 + $0x38] sm:$0xff] }
  0x4e   :  { %1520 = vmatprep.subr.bf16.mxu0 %v1519_v6  ;;  %v116_v17 = vld [vmem:[%s2171_s2 + $0x28] sm:$0xff]  ;;  %v117_v18 = vld [vmem:[%s2171_s2 + $0x30] sm:$0xff]  ;;  %v1531_v19 = vpack.c.bf16 %v2011_v16, %v2006_v15  ;;  %v2026_v20 = vld [vmem:[%s2170_s1 + $0x40] sm:$0xff] }
  0x4f   :  { %1522 = vmatpush3.bf16.msra.mxu0 %v1519_v6  ;;  %v2031_v21 = vld [vmem:[%s2170_s1 + $0x48] sm:$0xff]  ;;  %v118_v22 = vld [vmem:[%s2171_s2 + $0x38] sm:$0xff]  ;;  %v119_v23 = vld [vmem:[%s2171_s2 + $0x40] sm:$0xff] }
  0x50   :  { %1524 = vmatprep.subr.bf16.mxu0 %v1523_v9  ;;  %1275 = vmatmul.mubr.msk.f32.gmra.mrb[2].mxu0 %vm135_vm0, %v114_v11  ;;  %v1535_v24 = vpack.c.bf16 %v2031_v21, %v2026_v20  ;;  %v2046_v25 = vld [vmem:[%s2170_s1 + $0x50] sm:$0xff]  ;;  %v2051_v26 = vld [vmem:[%s2170_s1 + $0x58] sm:$0xff]  ;;  %v120_v27 = vld [vmem:[%s2171_s2 + $0x48] sm:$0xff] }
  0x51   :  { %1277 = vmatprep.mubr.msk.f32.mxu0 %vm135_vm0, %v115_v13  ;;  %v121_v28 = vld [vmem:[%s2171_s2 + $0x50] sm:$0xff]  ;;  %v1539_v29 = vpack.c.bf16 %v2051_v26, %v2046_v25  ;;  %v2066_v30 = vld [vmem:[%s2170_s1 + $0x60] sm:$0xff]  ;;  %v2071_v31 = vld [vmem:[%s2170_s1 + $0x68] sm:$0xff] }
  0x52   :  { %v122_v32 = vld [vmem:[%s2171_s2 + $0x58] sm:$0xff]  ;;  %v123_v33 = vld [vmem:[%s2171_s2 + $0x60] sm:$0xff]  ;;  %v1543_v34 = vpack.c.bf16 %v2071_v31, %v2066_v30  ;;  %v2086_v35 = vld [vmem:[%s2170_s1 + $0x70] sm:$0xff] }
  0x53   :  { %1526 = vmatpush3.bf16.msra.mxu0 %v1523_v9  ;;  %v2091_v36 = vld [vmem:[%s2170_s1 + $0x78] sm:$0xff]  ;;  %v124_v37 = vld [vmem:[%s2171_s2 + $0x68] sm:$0xff]  ;;  %v125_v38 = vld [vmem:[%s2171_s2 + $0x70] sm:$0xff] }
  0x54   :  { %1528 = vmatprep.subr.bf16.mxu0 %v1527_v14  ;;  %1278 = vmatmul.mubr.msk.f32.gmra.mrb[4].mxu0 %vm135_vm0, %v116_v17  ;;  %v1547_v39 = vpack.c.bf16 %v2091_v36, %v2086_v35  ;;  %v126_v40 = vld [vmem:[%s2171_s2 + $0x78] sm:$0xff]  ;;  %v329_v41 = vld [vmem:[#allocation3] sm:$0xff]  ;;  %v330_v42 = vld [vmem:[#allocation3 + $0x8] sm:$0xff] }
  0x55   :  { %1280 = vmatprep.mubr.msk.f32.mxu0 %vm135_vm0, %v117_v18  ;;  %v331_v43 = vld [vmem:[#allocation3 + $0x10] sm:$0xff]  ;;  %v332_v44 = vld [vmem:[#allocation3 + $0x18] sm:$0xff]  ;;  %v333_v45 = vld [vmem:[#allocation3 + $0x20] sm:$0xff] }
  0x56   :  { %v334_v46 = vld [vmem:[#allocation3 + $0x28] sm:$0xff]  ;;  %v335_v47 = vld [vmem:[#allocation3 + $0x30] sm:$0xff]  ;;  %v336_v48 = vld [vmem:[#allocation3 + $0x38] sm:$0xff] }
  0x57   :  { %1530 = vmatpush3.bf16.msra.mxu0 %v1527_v14  ;;  %v337_v49 = vld [vmem:[#allocation3 + $0x40] sm:$0xff]  ;;  %v338_v50 = vld [vmem:[#allocation3 + $0x48] sm:$0xff]  ;;  %v339_v51 = vld [vmem:[#allocation3 + $0x50] sm:$0xff] }
  0x58   :  { %1532 = vmatprep.subr.bf16.mxu0 %v1531_v19  ;;  %1281 = vmatmul.mubr.msk.f32.gmra.mrb[6].mxu0 %vm135_vm0, %v118_v22  ;;  %v340_v52 = vld [vmem:[#allocation3 + $0x58] sm:$0xff]  ;;  %v341_v53 = vld [vmem:[#allocation3 + $0x60] sm:$0xff]  ;;  %v342_v54 = vld [vmem:[#allocation3 + $0x68] sm:$0xff] }
  0x59   :  { %1283 = vmatprep.mubr.msk.f32.mxu0 %vm135_vm0, %v119_v23  ;;  %v343_v55 = vld [vmem:[#allocation3 + $0x70] sm:$0xff]  ;;  %v344_v56 = vld [vmem:[#allocation3 + $0x78] sm:$0xff]  ;;  %v506_v57 = vld [vmem:[#allocation6] sm:$0xff] }
  0x5a   :  { %1383 = vmatprep.mubr.f32.mxu1 %v506_v57  ;;  %v2111_v58 = vld [vmem:[%s2175_s6] ss:$0 sm:$0xff] }
  0x5b   :  { %1534 = vmatpush3.bf16.msra.mxu0 %v1531_v19 }
  0x5c   :  { %1536 = vmatprep.subr.bf16.mxu0 %v1535_v24  ;;  %1284 = vmatmul.mubr.msk.f32.gmra.mrb[8].mxu0 %vm135_vm0, %v120_v27 }
  0x5d   :  { %1286 = vmatprep.mubr.msk.f32.mxu0 %vm135_vm0, %v121_v28 }
  0x5f   :  { %1538 = vmatpush3.bf16.msra.mxu0 %v1535_v24 }
  0x60   :  { %1540 = vmatprep.subr.bf16.mxu0 %v1539_v29  ;;  %1287 = vmatmul.mubr.msk.f32.gmra.mrb[10].mxu0 %vm135_vm0, %v122_v32 }
  0x61   :  { %1289 = vmatprep.mubr.msk.f32.mxu0 %vm135_vm0, %v123_v33 }
  0x63   :  { %1542 = vmatpush3.bf16.msra.mxu0 %v1539_v29 }
  0x64   :  { %1544 = vmatprep.subr.bf16.mxu0 %v1543_v34  ;;  %1290 = vmatmul.mubr.msk.f32.gmra.mrb[12].mxu0 %vm135_vm0, %v124_v37 }
  0x65   :  { %1292 = vmatprep.mubr.msk.f32.mxu0 %vm135_vm0, %v125_v38 }
  0x67   :  { %1546 = vmatpush3.bf16.msra.mxu0 %v1543_v34 }
  0x68   :  { %1548 = vmatprep.subr.bf16.mxu0 %v1547_v39  ;;  %1293 = vmatmul.mubr.msk.f32.gmra.mrb[14].mxu0 %vm135_vm0, %v126_v40 }
  0x69   :  { %1327 = vmatprep.mubr.f32.mxu0 %v329_v41 }
  0x6b   :  { %1550 = vmatpush3.bf16.msra.mxu0 %v1547_v39 }
  0x6e   :  { %1328 = vmatmul.mubr.f32.vlgmr.msra.gmra.mrb[0].mxu0 %v330_v42 }
  0x6f   :  { %1330 = vmatprep.mubr.f32.mxu0 %v331_v43 }
  0x72   :  { %1331 = vmatmul.mubr.f32.gmra.mrb[2].mxu0 %v332_v44 }
  0x73   :  { %1333 = vmatprep.mubr.f32.mxu0 %v333_v45 }
  0x76   :  { %1334 = vmatmul.mubr.f32.gmra.mrb[4].mxu0 %v334_v46 }
  0x77   :  { %1336 = vmatprep.mubr.f32.mxu0 %v335_v47 }
  0x7a   :  { %1337 = vmatmul.mubr.f32.gmra.mrb[6].mxu0 %v336_v48 }
  0x7b   :  { %1339 = vmatprep.mubr.f32.mxu0 %v337_v49 }
  0x7e   :  { %1340 = vmatmul.mubr.f32.gmra.mrb[8].mxu0 %v338_v50 }
  0x7f   :  { %1342 = vmatprep.mubr.f32.mxu0 %v339_v51 }
  0x82   :  { %1343 = vmatmul.mubr.f32.gmra.mrb[10].mxu0 %v340_v52 }
  0x83   :  { %1345 = vmatprep.mubr.f32.mxu0 %v341_v53 }
  0x86   :  { %1346 = vmatmul.mubr.f32.gmra.mrb[12].mxu0 %v342_v54 }
  0x87   :  { %1348 = vmatprep.mubr.f32.mxu0 %v343_v55 }
  0x8a   :  { %1349 = vmatmul.mubr.f32.gmra.mrb[14].mxu0 %v344_v56 }
 0x141   :  { %v1329_v59 = vpop.f32.mrb[0].mxu0 }
 0x142   :  { %v1647_v60 = vadd.f32 %v1329_v59, %v2111_v58  ;;  %v411_v61 = vpop.f32.mrb[1].mxu0 }
 0x143   :  { %v1648_v62 = vadd.f32 %v2111_v58, %v411_v61 }
 0x144   :  { %v491_v63 = vmax.f32 %v1647_v60, 0.0 }
 0x145   :  { %v490_v0 = vmax.f32 %v1648_v62, 0.0  ;;  %v1332_v1 = vpop.f32.mrb[2].mxu0 }
 0x146   :  { %v1649_v2 = vadd.f32 %v1332_v1, %v2111_v58  ;;  %v421_v5 = vpop.f32.mrb[3].mxu0 }
 0x147   :  { %v1650_v6 = vadd.f32 %v2111_v58, %v421_v5  ;;  %v1551_v9 = vpack.c.bf16 %v491_v63, %v490_v0  ;;  %v703_v5 = vld [vmem:[#allocation8 + $0x8] sm:$0xff] }
 0x148   :  { %v493_v11 = vmax.f32 %v1649_v2, 0.0  ;;  %v702_v2 = vld [vmem:[#allocation8] sm:$0xff] }
 0x149   :  { %v492_v13 = vmax.f32 %v1650_v6, 0.0  ;;  %v1335_v14 = vpop.f32.mrb[4].mxu0  ;;  %1552 = vmatprep.subr.bf16.mxu1 %v1551_v9 }
 0x14a   :  { %v1651_v17 = vadd.f32 %v1335_v14, %v2111_v58  ;;  %v431_v18 = vpop.f32.mrb[5].mxu0  ;;  %1554 = vmatpush3.bf16.msra.mxu1 %v1551_v9  ;;  %v705_v14 = vld [vmem:[#allocation8 + $0x18] sm:$0xff] }
 0x14b   :  { %v1555_v19 = vpack.c.bf16 %v493_v11, %v492_v13  ;;  %v1652_v22 = vadd.f32 %v2111_v58, %v431_v18  ;;  %v1583_v11 = vpack.c.bf16 %v703_v5, %v702_v2  ;;  %v704_v13 = vld [vmem:[#allocation8 + $0x10] sm:$0xff]  ;;  %v891_v2 = vld [vmem:[#allocation9 + $0x28] sm:$0xff] }
 0x14c   :  { %v495_v23 = vmax.f32 %v1651_v17, 0.0  ;;  %v507_v17 = vld [vmem:[#allocation6 + $0x8] sm:$0xff]  ;;  %v508_v18 = vld [vmem:[#allocation6 + $0x10] sm:$0xff] }
 0x14d   :  { %v494_v24 = vmax.f32 %v1652_v22, 0.0  ;;  %v1338_v27 = vpop.f32.mrb[6].mxu0  ;;  %1556 = vmatprep.subr.bf16.mxu1 %v1555_v19  ;;  %v706_v22 = vld [vmem:[#allocation8 + $0x20] sm:$0xff] }
 0x14e   :  { %v1653_v28 = vadd.f32 %v1338_v27, %v2111_v58  ;;  %v441_v29 = vpop.f32.mrb[7].mxu0  ;;  %1558 = vmatpush3.bf16.msra.mxu1 %v1555_v19  ;;  %v1587_v19 = vpack.c.bf16 %v705_v14, %v704_v13  ;;  %v894_v13 = vld [vmem:[#allocation9 + $0x40] sm:$0xff]  ;;  %v895_v14 = vld [vmem:[#allocation9 + $0x48] sm:$0xff] }
 0x14f   :  { %v1559_v32 = vpack.c.bf16 %v495_v23, %v494_v24  ;;  %v1654_v33 = vadd.f32 %v2111_v58, %v441_v29  ;;  %v707_v23 = vld [vmem:[#allocation8 + $0x28] sm:$0xff]  ;;  %v510_v24 = vld [vmem:[#allocation6 + $0x20] sm:$0xff]  ;;  %v709_v29 = vld [vmem:[#allocation8 + $0x38] sm:$0xff] }
 0x150   :  { %v497_v34 = vmax.f32 %v1653_v28, 0.0  ;;  %v1591_v27 = vpack.c.bf16 %v707_v23, %v706_v22  ;;  %v708_v28 = vld [vmem:[#allocation8 + $0x30] sm:$0xff]  ;;  %v898_v23 = vld [vmem:[#allocation9 + $0x60] sm:$0xff] }
 0x151   :  { %v496_v37 = vmax.f32 %v1654_v33, 0.0  ;;  %v1341_v38 = vpop.f32.mrb[8].mxu0  ;;  %1560 = vmatprep.subr.bf16.mxu1 %v1559_v32  ;;  %v512_v33 = vld [vmem:[#allocation6 + $0x30] sm:$0xff] }
 0x152   :  { %v1655_v39 = vadd.f32 %v1341_v38, %v2111_v58  ;;  %v451_v40 = vpop.f32.mrb[9].mxu0  ;;  %1562 = vmatpush3.bf16.msra.mxu1 %v1559_v32  ;;  %v511_v32 = vld [vmem:[#allocation6 + $0x28] sm:$0xff] }
 0x153   :  { %v1563_v41 = vpack.c.bf16 %v497_v34, %v496_v37  ;;  %v1656_v42 = vadd.f32 %v2111_v58, %v451_v40  ;;  %v1595_v34 = vpack.c.bf16 %v709_v29, %v708_v28  ;;  %v710_v37 = vld [vmem:[#allocation8 + $0x40] sm:$0xff]  ;;  %v711_v38 = vld [vmem:[#allocation8 + $0x48] sm:$0xff] }
 0x154   :  { %v499_v43 = vmax.f32 %v1655_v39, 0.0  ;;  %v513_v39 = vld [vmem:[#allocation6 + $0x38] sm:$0xff]  ;;  %v514_v40 = vld [vmem:[#allocation6 + $0x40] sm:$0xff] }
 0x155   :  { %v498_v44 = vmax.f32 %v1656_v42, 0.0  ;;  %v1344_v45 = vpop.f32.mrb[10].mxu0  ;;  %1564 = vmatprep.subr.bf16.mxu1 %v1563_v41  ;;  %v712_v42 = vld [vmem:[#allocation8 + $0x50] sm:$0xff] }
 0x156   :  { %v1657_v46 = vadd.f32 %v1344_v45, %v2111_v58  ;;  %v461_v47 = vpop.f32.mrb[11].mxu0  ;;  %1566 = vmatpush3.bf16.msra.mxu1 %v1563_v41  ;;  %v1599_v41 = vpack.c.bf16 %v711_v38, %v710_v37  ;;  %v516_v45 = vld [vmem:[#allocation6 + $0x50] sm:$0xff] }
 0x157   :  { %v1567_v48 = vpack.c.bf16 %v499_v43, %v498_v44  ;;  %v1658_v49 = vadd.f32 %v2111_v58, %v461_v47  ;;  %v713_v43 = vld [vmem:[#allocation8 + $0x58] sm:$0xff]  ;;  %v515_v44 = vld [vmem:[#allocation6 + $0x48] sm:$0xff]  ;;  %v714_v47 = vld [vmem:[#allocation8 + $0x60] sm:$0xff] }
 0x158   :  { %v501_v50 = vmax.f32 %v1657_v46, 0.0  ;;  %v1603_v46 = vpack.c.bf16 %v713_v43, %v712_v42 }
 0x159   :  { %v500_v51 = vmax.f32 %v1658_v49, 0.0  ;;  %v1347_v52 = vpop.f32.mrb[12].mxu0  ;;  %1568 = vmatprep.subr.bf16.mxu1 %v1567_v48  ;;  %v517_v49 = vld [vmem:[#allocation6 + $0x58] sm:$0xff] }
 0x15a   :  { %v1659_v53 = vadd.f32 %v1347_v52, %v2111_v58  ;;  %v471_v54 = vpop.f32.mrb[13].mxu0  ;;  %1570 = vmatpush3.bf16.msra.mxu1 %v1567_v48  ;;  %v715_v48 = vld [vmem:[#allocation8 + $0x68] sm:$0xff] }
 0x15b   :  { %v1571_v55 = vpack.c.bf16 %v501_v50, %v500_v51  ;;  %v1660_v56 = vadd.f32 %v2111_v58, %v471_v54  ;;  %v518_v50 = vld [vmem:[#allocation6 + $0x60] sm:$0xff]  ;;  %v1607_v51 = vpack.c.bf16 %v715_v48, %v714_v47  ;;  %v519_v52 = vld [vmem:[#allocation6 + $0x68] sm:$0xff]  ;;  %v521_v54 = vld [vmem:[#allocation6 + $0x78] sm:$0xff] }
 0x15c   :  { %v503_v57 = vmax.f32 %v1659_v53, 0.0  ;;  %v520_v53 = vld [vmem:[#allocation6 + $0x70] sm:$0xff] }
 0x15d   :  { %v502_v59 = vmax.f32 %v1660_v56, 0.0  ;;  %v1350_v60 = vpop.f32.mrb[14].mxu0  ;;  %1572 = vmatprep.subr.bf16.mxu1 %v1571_v55  ;;  %v717_v56 = vld [vmem:[#allocation8 + $0x78] sm:$0xff] }
 0x15e   :  { %v1661_v61 = vadd.f32 %v1350_v60, %v2111_v58  ;;  %v481_v62 = vpop.f32.mrb[15].mxu0  ;;  %1574 = vmatpush3.bf16.msra.mxu1 %v1571_v55  ;;  %v716_v55 = vld [vmem:[#allocation8 + $0x70] sm:$0xff]  ;;  %v887_v60 = vld [vmem:[#allocation9 + $0x8] sm:$0xff] }
 0x15f   :  { %v1575_v63 = vpack.c.bf16 %v503_v57, %v502_v59  ;;  %v1662_v0 = vadd.f32 %v2111_v58, %v481_v62  ;;  %v509_v58 = vld [vmem:[#allocation6 + $0x18] sm:$0xff]  ;;  %v1611_v57 = vpack.c.bf16 %v717_v56, %v716_v55  ;;  %v886_v59 = vld [vmem:[#allocation9] sm:$0xff] }
 0x160   :  { %v505_v1 = vmax.f32 %v1661_v61, 0.0  ;;  %v888_v61 = vld [vmem:[#allocation9 + $0x10] sm:$0xff]  ;;  %v1615_v62 = vpack.c.bf16 %v887_v60, %v886_v59 }
 0x161   :  { %v504_v6 = vmax.f32 %v1662_v0, 0.0  ;;  %1576 = vmatprep.subr.bf16.mxu1 %v1575_v63 }
 0x162   :  { %1578 = vmatpush3.bf16.msra.mxu1 %v1575_v63  ;;  %v889_v63 = vld [vmem:[#allocation9 + $0x18] sm:$0xff]  ;;  %1616 = vmatprep.subr.bf16.mxu0 %v1615_v62 }
 0x163   :  { %v1579_v9 = vpack.c.bf16 %v505_v1, %v504_v6  ;;  %v1619_v0 = vpack.c.bf16 %v889_v63, %v888_v61  ;;  %v890_v1 = vld [vmem:[#allocation9 + $0x20] sm:$0xff]  ;;  %1618 = vmatpush3.bf16.msra.mxu0 %v1615_v62  ;;  %v892_v6 = vld [vmem:[#allocation9 + $0x30] sm:$0xff] }
 0x164   :  { %v1623_v5 = vpack.c.bf16 %v891_v2, %v890_v1 }
 0x165   :  { %1580 = vmatprep.subr.bf16.mxu1 %v1579_v9  ;;  %1620 = vmatprep.subr.bf16.mxu0 %v1619_v0 }
 0x166   :  { %1582 = vmatpush3.bf16.msra.mxu1 %v1579_v9  ;;  %v893_v9 = vld [vmem:[#allocation9 + $0x38] sm:$0xff] }
 0x167   :  { %1584 = vmatprep.subr.bf16.mxu1 %v1583_v11  ;;  %1622 = vmatpush3.bf16.msra.mxu0 %v1619_v0 }
 0x168   :  { %1624 = vmatprep.subr.bf16.mxu0 %v1623_v5 }
 0x169   :  { %1384 = vmatmul.mubr.f32.vlgmr.msra.gmra.mrb[0].mxu1 %v507_v17  ;;  %v1631_v17 = vpack.c.bf16 %v895_v14, %v894_v13 }
 0x16a   :  { %1386 = vmatprep.mubr.f32.mxu1 %v508_v18  ;;  %1586 = vmatpush3.bf16.msra.mxu1 %v1583_v11  ;;  %v1627_v11 = vpack.c.bf16 %v893_v9, %v892_v6  ;;  %v896_v18 = vld [vmem:[#allocation9 + $0x50] sm:$0xff] }
 0x16b   :  { %1588 = vmatprep.subr.bf16.mxu1 %v1587_v19  ;;  %1626 = vmatpush3.bf16.msra.mxu0 %v1623_v5 }
 0x16c   :  { %1628 = vmatprep.subr.bf16.mxu0 %v1627_v11 }
 0x16d   :  { %1387 = vmatmul.mubr.f32.gmra.mrb[2].mxu1 %v509_v58  ;;  %v899_v58 = vld [vmem:[#allocation9 + $0x68] sm:$0xff] }
 0x16e   :  { %1389 = vmatprep.mubr.f32.mxu1 %v510_v24  ;;  %1590 = vmatpush3.bf16.msra.mxu1 %v1587_v19  ;;  %v897_v19 = vld [vmem:[#allocation9 + $0x58] sm:$0xff]  ;;  %v1639_v24 = vpack.c.bf16 %v899_v58, %v898_v23 }
 0x16f   :  { %1592 = vmatprep.subr.bf16.mxu1 %v1591_v27  ;;  %1630 = vmatpush3.bf16.msra.mxu0 %v1627_v11  ;;  %v1635_v22 = vpack.c.bf16 %v897_v19, %v896_v18 }
 0x170   :  { %1632 = vmatprep.subr.bf16.mxu0 %v1631_v17 }
 0x171   :  { %1390 = vmatmul.mubr.f32.gmra.mrb[4].mxu1 %v511_v32 }
 0x172   :  { %1392 = vmatprep.mubr.f32.mxu1 %v512_v33  ;;  %1594 = vmatpush3.bf16.msra.mxu1 %v1591_v27  ;;  %v669_v27 = vstv %s668_s13 }
 0x173   :  { %1596 = vmatprep.subr.bf16.mxu1 %v1595_v34  ;;  %1634 = vmatpush3.bf16.msra.mxu0 %v1631_v17  ;;  %v670_v28 = vmul.f32 %v669_v27, %v1958_v3  ;;  %v671_v29 = vmul.f32 %v669_v27, %v1963_v4  ;;  %v672_v37 = vmul.f32 %v669_v27, %v1973_v7 }
 0x174   :  { %1636 = vmatprep.subr.bf16.mxu0 %v1635_v22  ;;  %v674_v43 = vmul.f32 %v669_v27, %v1986_v10  ;;  %v675_v3 = vmul.f32 %v669_v27, %v1995_v12  ;;  %v676_v7 = vmul.f32 %v669_v27, %v2006_v15  ;;  %v678_v10 = vmul.f32 %v669_v27, %v2026_v20 }
 0x175   :  { %1393 = vmatmul.mubr.f32.gmra.mrb[6].mxu1 %v513_v39  ;;  %v673_v39 = vmul.f32 %v669_v27, %v1978_v8  ;;  %v677_v8 = vmul.f32 %v669_v27, %v2011_v16  ;;  %v679_v12 = vmul.f32 %v669_v27, %v2031_v21  ;;  %v680_v15 = vmul.f32 %v669_v27, %v2046_v25 }
 0x176   :  { %1395 = vmatprep.mubr.f32.mxu1 %v514_v40  ;;  %1598 = vmatpush3.bf16.msra.mxu1 %v1595_v34  ;;  %v681_v16 = vmul.f32 %v669_v27, %v2051_v26  ;;  %v682_v20 = vmul.f32 %v669_v27, %v2066_v30  ;;  %v683_v21 = vmul.f32 %v669_v27, %v2071_v31  ;;  %v900_v30 = vld [vmem:[#allocation9 + $0x70] sm:$0xff]  ;;  %v901_v31 = vld [vmem:[#allocation9 + $0x78] sm:$0xff] }
 0x177   :  { %1600 = vmatprep.subr.bf16.mxu1 %v1599_v41  ;;  %1638 = vmatpush3.bf16.msra.mxu0 %v1635_v22  ;;  %v684_v25 = vmul.f32 %v669_v27, %v2086_v35  ;;  %v685_v26 = vmul.f32 %v669_v27, %v2091_v36  ;;  %v1643_v9 = vpack.c.bf16 %v901_v31, %v900_v30  ;;  %v1122_v35 = vld [vmem:[%s2177_s8] ss:$0 sm:$0xff] }
 0x178   :  { %1640 = vmatprep.subr.bf16.mxu0 %v1639_v24 }
 0x179   :  { %1396 = vmatmul.mubr.f32.gmra.mrb[8].mxu1 %v515_v44 }
 0x17a   :  { %1398 = vmatprep.mubr.f32.mxu1 %v516_v45  ;;  %1602 = vmatpush3.bf16.msra.mxu1 %v1599_v41 }
 0x17b   :  { %1604 = vmatprep.subr.bf16.mxu1 %v1603_v46  ;;  %1642 = vmatpush3.bf16.msra.mxu0 %v1639_v24 }
 0x17c   :  { %1644 = vmatprep.subr.bf16.mxu0 %v1643_v9 }
 0x17d   :  { %1399 = vmatmul.mubr.f32.gmra.mrb[10].mxu1 %v517_v49 }
 0x17e   :  { %1401 = vmatprep.mubr.f32.mxu1 %v518_v50  ;;  %1606 = vmatpush3.bf16.msra.mxu1 %v1603_v46 }
 0x17f   :  { %1608 = vmatprep.subr.bf16.mxu1 %v1607_v51  ;;  %1646 = vmatpush3.bf16.msra.mxu0 %v1643_v9 }
 0x181   :  { %1402 = vmatmul.mubr.f32.gmra.mrb[12].mxu1 %v519_v52 }
 0x182   :  { %1404 = vmatprep.mubr.f32.mxu1 %v520_v53  ;;  %1610 = vmatpush3.bf16.msra.mxu1 %v1607_v51 }
 0x183   :  { %1612 = vmatprep.subr.bf16.mxu1 %v1611_v57 }
 0x185   :  { %1405 = vmatmul.mubr.f32.gmra.mrb[14].mxu1 %v521_v54 }
 0x186   :  { %1614 = vmatpush3.bf16.msra.mxu1 %v1611_v57 }
 0x23c   :  { %v1385_v32 = vpop.f32.mrb[0].mxu1 }
 0x23d   :  { %v588_v33 = vpop.f32.mrb[1].mxu1  ;;  %v687_v38 = vadd.f32 %v1385_v32, %v671_v29 }
 0x23e   :  { %v686_v34 = vadd.f32 %v670_v28, %v588_v33 }
 0x240   :  { %v1388_v40 = vpop.f32.mrb[2].mxu1  ;;  %1439 = vmatprep.mubr.f32.mxu1 %v686_v34 }
 0x241   :  { %v598_v41 = vpop.f32.mrb[3].mxu1  ;;  %1440 = vmatmul.mubr.f32.vlgmr.msra.gmra.mrb[16].mxu1 %v687_v38  ;;  %v689_v44 = vadd.f32 %v1388_v40, %v673_v39 }
 0x242   :  { %v688_v42 = vadd.f32 %v672_v37, %v598_v41 }
 0x244   :  { %v1391_v45 = vpop.f32.mrb[4].mxu1  ;;  %1442 = vmatprep.mubr.f32.mxu1 %v688_v42 }
 0x245   :  { %v608_v4 = vpop.f32.mrb[5].mxu1  ;;  %1443 = vmatmul.mubr.f32.gmra.mrb[18].mxu1 %v689_v44  ;;  %v691_v47 = vadd.f32 %v1391_v45, %v675_v3 }
 0x246   :  { %v690_v46 = vadd.f32 %v674_v43, %v608_v4 }
 0x248   :  { %v1394_v48 = vpop.f32.mrb[6].mxu1  ;;  %1445 = vmatprep.mubr.f32.mxu1 %v690_v46 }
 0x249   :  { %v618_v49 = vpop.f32.mrb[7].mxu1  ;;  %1446 = vmatmul.mubr.f32.gmra.mrb[20].mxu1 %v691_v47  ;;  %v693_v51 = vadd.f32 %v1394_v48, %v677_v8 }
 0x24a   :  { %v692_v50 = vadd.f32 %v676_v7, %v618_v49 }
 0x24c   :  { %v1397_v52 = vpop.f32.mrb[8].mxu1  ;;  %1448 = vmatprep.mubr.f32.mxu1 %v692_v50 }
 0x24d   :  { %v628_v53 = vpop.f32.mrb[9].mxu1  ;;  %1449 = vmatmul.mubr.f32.gmra.mrb[22].mxu1 %v693_v51  ;;  %v695_v55 = vadd.f32 %v1397_v52, %v679_v12 }
 0x24e   :  { %v694_v54 = vadd.f32 %v678_v10, %v628_v53 }
 0x250   :  { %v1400_v56 = vpop.f32.mrb[10].mxu1  ;;  %1451 = vmatprep.mubr.f32.mxu1 %v694_v54 }
 0x251   :  { %v638_v57 = vpop.f32.mrb[11].mxu1  ;;  %1452 = vmatmul.mubr.f32.gmra.mrb[24].mxu1 %v695_v55  ;;  %v697_v60 = vadd.f32 %v1400_v56, %v681_v16 }
 0x252   :  { %v696_v59 = vadd.f32 %v680_v15, %v638_v57 }
 0x254   :  { %v1403_v61 = vpop.f32.mrb[12].mxu1  ;;  %1454 = vmatprep.mubr.f32.mxu1 %v696_v59 }
 0x255   :  { %v648_v62 = vpop.f32.mrb[13].mxu1  ;;  %1455 = vmatmul.mubr.f32.gmra.mrb[26].mxu1 %v697_v60  ;;  %v699_v0 = vadd.f32 %v1403_v61, %v683_v21  ;;  %v1123_v60 = vld [vmem:[%s2179_s10] ss:$0 sm:$0xff]  ;;  %s1810_s10 = smov [#allocation11]  }
 0x256   :  { %v698_v63 = vadd.f32 %v682_v20, %v648_v62  ;;  %s1091_s16 = sshll.u32 %s1810_s10, 4  ;;  %s1092_s16 = int_to_ptr.vmem [resolvable:$true] %s1091_s16 }
 0x257   :  { %s1774_s17 = scalar_lea.vmem %s1092_s16, 2048  ;;  %p1779_p5 = scmp.lt.s32.totalorder %s1092_s16, %s1092_s16 }
 0x258   :  { %v1406_v1 = vpop.f32.mrb[14].mxu1  ;;  %1457 = vmatprep.mubr.f32.mxu1 %v698_v63  ;;  %p1775_p4 = scmp.ne.s32.totalorder %s1092_s16, %s1774_s17  ;;  %p1780_p6 = scmp.lt.s32.totalorder %s1774_s17, %s1774_s17 }
 0x259   :  { %v658_v2 = vpop.f32.mrb[15].mxu1  ;;  %1458 = vmatmul.mubr.f32.gmra.mrb[28].mxu1 %v699_v0  ;;  %v701_v6 = vadd.f32 %v1406_v1, %v685_v26 }
 0x25a   :  { %v700_v5 = vadd.f32 %v684_v25, %v658_v2  ;;  %p1781_p7 = por %p1780_p6, %p1779_p5 }
 0x25c   :  { %1460 = vmatprep.mubr.f32.mxu1 %v700_v5  ;;  %p1782_p8 = pnand %p1781_p7, %p1775_p4 }
 0x25d   :  { %1461 = vmatmul.mubr.f32.gmra.mrb[30].mxu1 %v701_v6 }
 0x314   :  { %v1441_v11 = vpop.f32.mrb[16].mxu1 }
 0x315   :  { %v797_v13 = vadd.f32 %v1441_v11, %v1122_v35  ;;  %v791_v36 = vpop.f32.mrb[17].mxu1 }
 0x316   :  { %v792_v14 = vadd.f32 %v1122_v35, %v791_v36 }
 0x317   :  { %v871_v19 = vmax.f32 %v797_v13, 0.0 }
 0x318   :  { %v870_v17 = vmax.f32 %v792_v14, 0.0  ;;  %v1444_v18 = vpop.f32.mrb[18].mxu1 }
 0x319   :  { %v807_v22 = vadd.f32 %v1444_v18, %v1122_v35  ;;  %v801_v23 = vpop.f32.mrb[19].mxu1 }
 0x31a   :  { %v802_v58 = vadd.f32 %v1122_v35, %v801_v23  ;;  %1495 = vmatprep.mubr.f32.mxu0 %v870_v17 }
 0x31b   :  { %1496 = vmatmul.mubr.f32.vlgmr.msra.gmra.mrb[16].mxu0 %v871_v19  ;;  %v873_v28 = vmax.f32 %v807_v22, 0.0 }
 0x31c   :  { %v872_v24 = vmax.f32 %v802_v58, 0.0  ;;  %v1447_v27 = vpop.f32.mrb[20].mxu1 }
 0x31d   :  { %v817_v29 = vadd.f32 %v1447_v27, %v1122_v35  ;;  %v811_v32 = vpop.f32.mrb[21].mxu1 }
 0x31e   :  { %v812_v33 = vadd.f32 %v1122_v35, %v811_v32  ;;  %1498 = vmatprep.mubr.f32.mxu0 %v872_v24 }
 0x31f   :  { %1499 = vmatmul.mubr.f32.gmra.mrb[18].mxu0 %v873_v28  ;;  %v875_v38 = vmax.f32 %v817_v29, 0.0 }
 0x320   :  { %v874_v34 = vmax.f32 %v812_v33, 0.0  ;;  %v1450_v37 = vpop.f32.mrb[22].mxu1 }
 0x321   :  { %v827_v39 = vadd.f32 %v1450_v37, %v1122_v35  ;;  %v821_v40 = vpop.f32.mrb[23].mxu1 }
 0x322   :  { %v822_v41 = vadd.f32 %v1122_v35, %v821_v40  ;;  %1501 = vmatprep.mubr.f32.mxu0 %v874_v34 }
 0x323   :  { %1502 = vmatmul.mubr.f32.gmra.mrb[20].mxu0 %v875_v38  ;;  %v877_v44 = vmax.f32 %v827_v39, 0.0 }
 0x324   :  { %v876_v42 = vmax.f32 %v822_v41, 0.0  ;;  %v1453_v43 = vpop.f32.mrb[24].mxu1 }
 0x325   :  { %v837_v3 = vadd.f32 %v1453_v43, %v1122_v35  ;;  %v831_v45 = vpop.f32.mrb[25].mxu1 }
 0x326   :  { %v832_v4 = vadd.f32 %v1122_v35, %v831_v45  ;;  %1504 = vmatprep.mubr.f32.mxu0 %v876_v42 }
 0x327   :  { %1505 = vmatmul.mubr.f32.gmra.mrb[22].mxu0 %v877_v44  ;;  %v879_v47 = vmax.f32 %v837_v3, 0.0 }
 0x328   :  { %v878_v46 = vmax.f32 %v832_v4, 0.0  ;;  %v1456_v7 = vpop.f32.mrb[26].mxu1 }
 0x329   :  { %v847_v8 = vadd.f32 %v1456_v7, %v1122_v35  ;;  %v841_v48 = vpop.f32.mrb[27].mxu1 }
 0x32a   :  { %v842_v49 = vadd.f32 %v1122_v35, %v841_v48  ;;  %1507 = vmatprep.mubr.f32.mxu0 %v878_v46 }
 0x32b   :  { %1508 = vmatmul.mubr.f32.gmra.mrb[24].mxu0 %v879_v47  ;;  %v881_v51 = vmax.f32 %v847_v8, 0.0 }
 0x32c   :  { %v880_v50 = vmax.f32 %v842_v49, 0.0  ;;  %v1459_v10 = vpop.f32.mrb[28].mxu1 }
 0x32d   :  { %v857_v12 = vadd.f32 %v1459_v10, %v1122_v35  ;;  %v851_v52 = vpop.f32.mrb[29].mxu1 }
 0x32e   :  { %v852_v53 = vadd.f32 %v1122_v35, %v851_v52  ;;  %1510 = vmatprep.mubr.f32.mxu0 %v880_v50 }
 0x32f   :  { %1511 = vmatmul.mubr.f32.gmra.mrb[26].mxu0 %v881_v51  ;;  %v883_v55 = vmax.f32 %v857_v12, 0.0 }
 0x330   :  { %v882_v54 = vmax.f32 %v852_v53, 0.0  ;;  %v1462_v15 = vpop.f32.mrb[30].mxu1 }
 0x331   :  { %v867_v16 = vadd.f32 %v1462_v15, %v1122_v35  ;;  %v861_v56 = vpop.f32.mrb[31].mxu1 }
 0x332   :  { %v862_v57 = vadd.f32 %v1122_v35, %v861_v56  ;;  %1513 = vmatprep.mubr.f32.mxu0 %v882_v54 }
 0x333   :  { %1514 = vmatmul.mubr.f32.gmra.mrb[28].mxu0 %v883_v55  ;;  %v885_v20 = vmax.f32 %v867_v16, 0.0 }
 0x334   :  { %v884_v59 = vmax.f32 %v862_v57, 0.0 }
 0x336   :  { %1516 = vmatprep.mubr.f32.mxu0 %v884_v59 }
 0x337   :  { %1517 = vmatmul.mubr.f32.gmra.mrb[30].mxu0 %v885_v20 }
 0x3ee   :  { %v1497_v21 = vpop.f32.mrb[16].mxu0 }
 0x3ef   :  { %v981_v61 = vadd.f32 %v1497_v21, %v1123_v60  ;;  %v975_v62 = vpop.f32.mrb[17].mxu0 }
 0x3f0   :  { %v976_v63 = vadd.f32 %v1123_v60, %v975_v62 }
 0x3f1   :  { %v1055_v25 = vmax.f32 %v981_v61, 0.0 }
 0x3f2   :  { %v1054_v0 = vmax.f32 %v976_v63, 0.0  ;;  %v1500_v26 = vpop.f32.mrb[18].mxu0 }
 0x3f3   :  { %1071 = vst [vmem:[#allocation11 + $0x8] sm:$0xff] %v1055_v25  ;;  %v991_v1 = vadd.f32 %v1500_v26, %v1123_v60  ;;  %v985_v2 = vpop.f32.mrb[19].mxu0 }
 0x3f4   :  { %1070 = vst [vmem:[#allocation11] sm:$0xff] %v1054_v0  ;;  %v986_v5 = vadd.f32 %v1123_v60, %v985_v2 }
 0x3f5   :  { %v1057_v6 = vmax.f32 %v991_v1, 0.0 }
 0x3f6   :  { %v1056_v30 = vmax.f32 %v986_v5, 0.0  ;;  %v1503_v31 = vpop.f32.mrb[20].mxu0 }
 0x3f7   :  { %1073 = vst [vmem:[#allocation11 + $0x18] sm:$0xff] %v1057_v6  ;;  %v1001_v9 = vadd.f32 %v1503_v31, %v1123_v60  ;;  %v995_v35 = vpop.f32.mrb[21].mxu0 }
 0x3f8   :  { %1072 = vst [vmem:[#allocation11 + $0x10] sm:$0xff] %v1056_v30  ;;  %v996_v11 = vadd.f32 %v1123_v60, %v995_v35 }
 0x3f9   :  { %v1059_v13 = vmax.f32 %v1001_v9, 0.0 }
 0x3fa   :  { %v1058_v36 = vmax.f32 %v996_v11, 0.0  ;;  %v1506_v14 = vpop.f32.mrb[22].mxu0 }
 0x3fb   :  { %1075 = vst [vmem:[#allocation11 + $0x28] sm:$0xff] %v1059_v13  ;;  %v1011_v17 = vadd.f32 %v1506_v14, %v1123_v60  ;;  %v1005_v18 = vpop.f32.mrb[23].mxu0 }
 0x3fc   :  { %1074 = vst [vmem:[#allocation11 + $0x20] sm:$0xff] %v1058_v36  ;;  %v1006_v19 = vadd.f32 %v1123_v60, %v1005_v18 }
 0x3fd   :  { %v1061_v22 = vmax.f32 %v1011_v17, 0.0 }
 0x3fe   :  { %v1060_v23 = vmax.f32 %v1006_v19, 0.0  ;;  %v1509_v58 = vpop.f32.mrb[24].mxu0 }
 0x3ff   :  { %1077 = vst [vmem:[#allocation11 + $0x38] sm:$0xff] %v1061_v22  ;;  %v1021_v24 = vadd.f32 %v1509_v58, %v1123_v60  ;;  %v1015_v27 = vpop.f32.mrb[25].mxu0 }
 0x400   :  { %1076 = vst [vmem:[#allocation11 + $0x30] sm:$0xff] %v1060_v23  ;;  %v1016_v28 = vadd.f32 %v1123_v60, %v1015_v27 }
 0x401   :  { %v1063_v29 = vmax.f32 %v1021_v24, 0.0 }
 0x402   :  { %v1062_v32 = vmax.f32 %v1016_v28, 0.0  ;;  %v1512_v33 = vpop.f32.mrb[26].mxu0 }
 0x403   :  { %1079 = vst [vmem:[#allocation11 + $0x48] sm:$0xff] %v1063_v29  ;;  %v1031_v34 = vadd.f32 %v1512_v33, %v1123_v60  ;;  %v1025_v37 = vpop.f32.mrb[27].mxu0 }
 0x404   :  { %1078 = vst [vmem:[#allocation11 + $0x40] sm:$0xff] %v1062_v32  ;;  %v1026_v38 = vadd.f32 %v1123_v60, %v1025_v37 }
 0x405   :  { %v1065_v39 = vmax.f32 %v1031_v34, 0.0 }
 0x406   :  { %v1064_v40 = vmax.f32 %v1026_v38, 0.0  ;;  %v1515_v41 = vpop.f32.mrb[28].mxu0 }
 0x407   :  { %1081 = vst [vmem:[#allocation11 + $0x58] sm:$0xff] %v1065_v39  ;;  %v1041_v42 = vadd.f32 %v1515_v41, %v1123_v60  ;;  %v1035_v43 = vpop.f32.mrb[29].mxu0 }
 0x408   :  { %1080 = vst [vmem:[#allocation11 + $0x50] sm:$0xff] %v1064_v40  ;;  %v1036_v44 = vadd.f32 %v1123_v60, %v1035_v43 }
 0x409   :  { %v1067_v3 = vmax.f32 %v1041_v42, 0.0 }
 0x40a   :  { %v1066_v45 = vmax.f32 %v1036_v44, 0.0  ;;  %v1518_v4 = vpop.f32.mrb[30].mxu0 }
 0x40b   :  { %1083 = vst [vmem:[#allocation11 + $0x68] sm:$0xff] %v1067_v3  ;;  %v1051_v46 = vadd.f32 %v1518_v4, %v1123_v60  ;;  %v1045_v7 = vpop.f32.mrb[31].mxu0 }
 0x40c   :  { %1082 = vst [vmem:[#allocation11 + $0x60] sm:$0xff] %v1066_v45  ;;  %v1046_v47 = vadd.f32 %v1123_v60, %v1045_v7 }
 0x40d   :  { %v1069_v8 = vmax.f32 %v1051_v46, 0.0 }
 0x40e   :  { %v1068_v48 = vmax.f32 %v1046_v47, 0.0 }
 0x40f   :  { %1085 = vst [vmem:[#allocation11 + $0x78] sm:$0xff] %v1069_v8 }
 0x410   :  { %1084 = vst [vmem:[#allocation11 + $0x70] sm:$0xff] %v1068_v48 }
 0x411   :  { %1785 = shalt.err (!%p1782_p8)
}
 0x412   :  { %s1786_s3 = scalar_lea.hbm %s2180_s11, 2048 }
 0x413   :  { %p1787_p9 = scmp.ne.s32.totalorder %s2180_s11, %s1786_s3  ;;  %p1790_p10 = scmp.lt.u32.totalorder %s1786_s3, %s2180_s11 }
 0x415   :  { %p1792_p11 = pnand %p1790_p10, %p1787_p9 }
 0x417   :  { %1795 = shalt.err (!%p1792_p11)
}
 0x418   :  { %1097 = dma.vmem_to_hbm [thread:$0]  %s1092_s16, 2048, %s2180_s11, [#allocation5], %s1806_s29, %s1806_s29, %s1807_s30  }
 0x419   :  { %1802 = dma.done.wait [#allocation5], 2048  }
 0x41a   :  { %1803 = vsyncadd [#allocation5], 4294965248 }
 0x41b   :  { %1101 = vsyncpa [#allocation4], 1 }
 0x41c   :  { %1102 = vsyncpa [#allocation7], 1 }
 0x41d   :  { %1103 = vsyncpa [#allocation10], 1 }
 0x41e   :  { %1104 = vsyncpa [#allocation5], 1 }

</bundles_post_ra>
